<compile_context>
chip_gen: v7x
topology: tpu7x:2x2x1
jax: 0.10.0
libtpu: 0.0.40
codegen_flags: <defaults>
</compile_context>

<pallas_src>
import math
import functools

import jax
import jax.numpy as jnp
from jax import lax
from jax.experimental import pallas as pl
from jax.experimental.pallas import tpu as pltpu


_NEG = -1e30


def _round_up(v, m):
    return (v + m - 1) // m * m


def _vmem_capacity_bytes(default=64 << 20):
    """Physical VMEM of the local TPU (conservative default if unqueryable)."""
    try:
        cap = getattr(pltpu.get_tpu_info(), "vmem_capacity_bytes", None)
        if cap:
            return int(cap)
    except Exception:
        pass
    return default


def _maybe_buffered_spec(block_shape, index_map, buffer_count):
    """BlockSpec with N-deep pipelining when supported, plain spec otherwise."""
    if buffer_count and buffer_count > 2 and hasattr(pl, "Buffered"):
        try:
            return pl.BlockSpec(block_shape, index_map,
                                pipeline_mode=pl.Buffered(buffer_count))
        except Exception:
            pass
    return pl.BlockSpec(block_shape, index_map)


def _arcface_kernel(x_ref, wt_ref, lbl_ref, logits_ref, lossrow_ref,
                    m_sc, l_sc, lbl_sc, *,
                    scale, cos_m, sin_m, th, mm, easy_margin, ls_eps,
                    n_rows, n_classes, class_padded):
    bi = pl.program_id(0)
    ci = pl.program_id(1)
    nci = pl.num_programs(1)
    tb, tc = logits_ref.shape

    # ---- once per batch tile: reset the online-logsumexp accumulators.
    @pl.when(ci == 0)
    def _():
        m_sc[...] = jnp.full_like(m_sc, _NEG)
        l_sc[...] = jnp.zeros_like(l_sc)
        lbl_sc[...] = jnp.zeros_like(lbl_sc)

    # ---- cosine = x_n @ w_n^T for this tile.  Weight is pre-transposed to
    #      (D, C) in the wrapper so the MXU sees a natural (M,K)x(K,N) feed.
    cosine = jnp.dot(x_ref[...], wt_ref[...],
                     preferred_element_type=jnp.float32)          # (tb, tc) f32

    lbl = lbl_ref[...]                                            # (tb, 1) i32
    col = ci * tc + lax.broadcasted_iota(jnp.int32, (tb, tc), 1)
    is_label = col == lbl                                         # (tb, tc)

    def _margin(c):
        s = jnp.sqrt(jnp.maximum(1.0 - c * c, 0.0))
        p = c * cos_m - s * sin_m
        if easy_margin:
            return jnp.where(c > 0.0, p, c)
        return jnp.where(c > th, p, c - mm)

    if ls_eps > 0.0:
        # Label smoothing touches every column -> full-tile margin math.
        phi = _margin(cosine)
        oh = (1.0 - ls_eps) * is_label.astype(jnp.float32) + ls_eps / n_classes
        logits = (oh * phi + (1.0 - oh) * cosine) * scale
        lbl_logit = jnp.sum(jnp.where(is_label, logits, 0.0),
                            axis=-1, keepdims=True)               # (tb, 1)
    else:
        # Fast path: the margin only changes the label column, so run the
        # sqrt/threshold math on a (tb, 1) vector and patch that one column.
        label_cos = jnp.sum(jnp.where(is_label, cosine, 0.0),
                            axis=-1, keepdims=True)               # (tb, 1)
        phi_l = _margin(label_cos)                                # (tb, 1)
        delta = (phi_l - label_cos) * scale                       # (tb, 1)
        logits = cosine * scale + jnp.where(is_label, delta, 0.0)
        has_label = jnp.logical_and(lbl >= ci * tc, lbl < ci * tc + tc)
        lbl_logit = jnp.where(has_label, phi_l * scale, 0.0)      # (tb, 1)

    logits_ref[...] = logits.astype(logits_ref.dtype)
    lbl_sc[...] = lbl_sc[...] + lbl_logit

    # ---- online logsumexp across class tiles (f32 logits throughout).
    def _accumulate(s):
        m_new = jnp.maximum(m_sc[...], jnp.max(s, axis=-1, keepdims=True))
        alpha = jnp.exp(m_sc[...] - m_new)
        l_sc[...] = alpha * l_sc[...] + jnp.sum(jnp.exp(s - m_new),
                                                axis=-1, keepdims=True)
        m_sc[...] = m_new

    if class_padded:
        # Padded class columns only exist on the last class tile; interior
        # tiles skip the compare+select entirely.
        @pl.when(ci != nci - 1)
        def _():
            _accumulate(logits)

        @pl.when(ci == nci - 1)
        def _():
            _accumulate(jnp.where(col < n_classes, logits, _NEG))
    else:
        _accumulate(logits)

    # ---- last class tile: emit per-row CE (padded rows zeroed out).
    @pl.when(ci == nci - 1)
    def _():
        per_row = m_sc[...] + jnp.log(l_sc[...]) - lbl_sc[...]
        row = bi * tb + lax.broadcasted_iota(jnp.int32, (tb, 1), 0)
        lossrow_ref[...] = jnp.where(row < n_rows, per_row, 0.0)


def arcface_forward(x, weight, labels, *, scale, margin,
                    easy_margin=False, ls_eps=0.0,
                    block_b=256, block_c=1024,
                    matmul_dtype=jnp.bfloat16, logits_dtype=jnp.float32,
                    weight_buffer_count=3):
    """ArcFace forward: returns (scaled logits (B, C), mean CE loss scalar)."""
    B, D = x.shape
    C, Dw = weight.shape
    assert D == Dw
    assert block_b % 8 == 0 and block_c % 128 == 0

    tb = min(block_b, _round_up(B, 8))
    tc = min(block_c, _round_up(C, 128))
    B_pad = _round_up(B, tb)
    C_pad = _round_up(C, tc)
    D_pad = _round_up(D, 128)            # lane-aligned contraction dim

    # Hoisted L2 normalization (matches F.normalize: v / max(||v||, 1e-12)),
    # both operands streamed to the kernel as bf16 to halve HBM bytes.
    x32 = x.astype(jnp.float32)
    xn = x32 / jnp.maximum(jnp.linalg.norm(x32, axis=-1, keepdims=True), 1e-12)
    xn = jnp.pad(xn.astype(matmul_dtype), ((0, B_pad - B), (0, D_pad - D)))

    w32 = weight.astype(jnp.float32)
    wn = w32 / jnp.maximum(jnp.linalg.norm(w32, axis=-1, keepdims=True), 1e-12)
    # Transposed (D, C) layout: natural (M,K)x(K,N) MXU feed in the kernel.
    wn_t = jnp.pad(wn.astype(matmul_dtype).T,
                   ((0, D_pad - D), (0, C_pad - C)))

    lbl_pad = jnp.pad(labels.astype(jnp.int32),
                      (0, B_pad - B)).reshape(B_pad, 1)

    kernel = functools.partial(
        _arcface_kernel,
        scale=float(scale),
        cos_m=math.cos(margin),
        sin_m=math.sin(margin),
        th=math.cos(math.pi - margin),
        mm=math.sin(math.pi - margin) * margin,
        easy_margin=bool(easy_margin),
        ls_eps=float(ls_eps),
        n_rows=B,
        n_classes=C,
        class_padded=(C_pad != C),
    )

    # VMEM budget: N-buffered weight tile + double-buffered x/labels/outputs
    # + (tb,1) accumulators, capped at 3/4 of physical VMEM so the request
    # can never exceed v7x's 64 MiB (v5e/v6e have 128 MiB and keep headroom).
    mm_bytes = jnp.dtype(matmul_dtype).itemsize
    out_bytes = jnp.dtype(logits_dtype).itemsize
    wbuf = max(2, int(weight_buffer_count))
    est = (2 * (tb * D_pad * mm_bytes + tb * 4)      # x + labels (dbl-buf)
           + wbuf * D_pad * tc * mm_bytes            # weight tiles
           + 2 * (tb * tc * out_bytes + tb * 4)      # outputs (dbl-buf)
           + 3 * tb * 4)                             # (tb, 1) accumulators
    cap = _vmem_capacity_bytes()
    vmem_limit = int(min(max(2 * est + (8 << 20), 32 << 20), (cap * 3) // 4))

    grid = (B_pad // tb, C_pad // tc)
    # TODO(synk): when C_pad*D_pad*2B comfortably fits the VMEM budget, keep
    # wn fully resident (full-array BlockSpec, index_map -> (0, 0)) so it is
    # fetched once instead of once per batch tile.

    def _call(buffer_count):
        return pl.pallas_call(
            kernel,
            out_shape=(
                jax.ShapeDtypeStruct((B_pad, C_pad), logits_dtype),
                jax.ShapeDtypeStruct((B_pad, 1), jnp.float32),
            ),
            grid=grid,
            in_specs=[
                pl.BlockSpec((tb, D_pad), lambda bi, ci: (bi, 0)),   # x_n
                _maybe_buffered_spec((D_pad, tc), lambda bi, ci: (0, ci),
                                     buffer_count),                  # w_n^T
                pl.BlockSpec((tb, 1), lambda bi, ci: (bi, 0)),        # labels
            ],
            out_specs=(
                pl.BlockSpec((tb, tc), lambda bi, ci: (bi, ci)),      # logits
                pl.BlockSpec((tb, 1), lambda bi, ci: (bi, 0)),        # CE rows
            ),
            scratch_shapes=[
                pltpu.VMEM((tb, 1), jnp.float32),    # running max
                pltpu.VMEM((tb, 1), jnp.float32),    # running sum(exp)
                pltpu.VMEM((tb, 1), jnp.float32),    # label logit
            ],
            compiler_params=pltpu.CompilerParams(
                dimension_semantics=("parallel", "arbitrary"),
                vmem_limit_bytes=vmem_limit),
        )(xn, wn_t, lbl_pad)

    try:
        logits_pad, loss_rows = _call(weight_buffer_count)
    except Exception:
        # Fallback if this jax build rejects pipeline_mode on a pallas_call
        # BlockSpec: use the default double-buffering.
        logits_pad, loss_rows = _call(2)

    logits = logits_pad[:B, :C].astype(jnp.float32)
    loss = jnp.sum(loss_rows[:B, 0]) / B          # mean over the true batch
    return logits, loss


def _reference(x, weight, labels, *, scale, margin, easy_margin, ls_eps):
    """Plain-JAX reference mirroring the kernel's bf16 MXU operands."""
    xn = x / jnp.maximum(jnp.linalg.norm(x, axis=-1, keepdims=True), 1e-12)
    wn = weight / jnp.maximum(
        jnp.linalg.norm(weight, axis=-1, keepdims=True), 1e-12)
    cos = jnp.dot(xn.astype(jnp.bfloat16), wn.astype(jnp.bfloat16).T,
                  preferred_element_type=jnp.float32)
    sin = jnp.sqrt(jnp.maximum(1.0 - cos * cos, 0.0))
    phi = cos * math.cos(margin) - sin * math.sin(margin)
    if easy_margin:
        phi = jnp.where(cos > 0.0, phi, cos)
    else:
        phi = jnp.where(cos > math.cos(math.pi - margin), phi,
                        cos - math.sin(math.pi - margin) * margin)
    C = weight.shape[0]
    oh = jax.nn.one_hot(labels, C, dtype=jnp.float32)
    oh_s = (1.0 - ls_eps) * oh + ls_eps / C if ls_eps > 0 else oh
    out = (oh_s * phi + (1.0 - oh_s) * cos) * scale
    loss = jnp.mean(jax.nn.logsumexp(out, axis=-1) - jnp.sum(oh * out, axis=-1))
    return out, loss


if __name__ == "__main__":
    # Small shapes that still exercise tiling + padding.
    B, IN_FEATURES, OUT_FEATURES = 14, 64, 500
    SCALE, MARGIN = 30.0, 0.5

    key = jax.random.PRNGKey(0)
    kx, kw, kl = jax.random.split(key, 3)

    x = jax.random.normal(kx, (B, IN_FEATURES), dtype=jnp.float32)

    # Deterministic xavier_uniform_-style init (out_features, in_features).
    bound = math.sqrt(6.0 / (IN_FEATURES + OUT_FEATURES))
    weight = jax.random.uniform(kw, (OUT_FEATURES, IN_FEATURES),
                                dtype=jnp.float32, minval=-bound, maxval=bound)
    labels = jax.random.randint(kl, (B,), 0, OUT_FEATURES, dtype=jnp.int32)

    # Config A: ls_eps == 0 fast path, small tiles -> grid (2, 4), exercises
    # batch padding, class padding and the per-label-column margin fixup.
    logits, loss = arcface_forward(
        x, weight, labels, scale=SCALE, margin=MARGIN,
        easy_margin=False, ls_eps=0.0, block_b=8, block_c=128)
    jax.block_until_ready((logits, loss))
    ref_logits, ref_loss = _reference(
        x, weight, labels, scale=SCALE, margin=MARGIN,
        easy_margin=False, ls_eps=0.0)
    assert jnp.allclose(logits, ref_logits, atol=2e-2, rtol=2e-2), (
        float(jnp.max(jnp.abs(logits - ref_logits))))
    assert jnp.allclose(loss, ref_loss, atol=2e-2, rtol=2e-2), (
        float(loss), float(ref_loss))

    # Config B: label smoothing + easy margin, default (large) tiles.
    logits2, loss2 = arcface_forward(
        x, weight, labels, scale=SCALE, margin=MARGIN,
        easy_margin=True, ls_eps=0.1)
    jax.block_until_ready((logits2, loss2))
    ref_logits2, ref_loss2 = _reference(
        x, weight, labels, scale=SCALE, margin=MARGIN,
        easy_margin=True, ls_eps=0.1)
    assert jnp.allclose(logits2, ref_logits2, atol=2e-2, rtol=2e-2), (
        float(jnp.max(jnp.abs(logits2 - ref_logits2))))
    assert jnp.allclose(loss2, ref_loss2, atol=2e-2, rtol=2e-2), (
        float(loss2), float(ref_loss2))

    print("KERNEL_OK")
</pallas_src>

<mosaic_0001>
module attributes {stable_mosaic.version = 11 : i64} {
  func.func @_arcface_kernel(%arg0: i32, %arg1: i32, %arg2: memref<8x128xbf16, #tpu.memory_space<vmem>>, %arg3: memref<128x128xbf16, #tpu.memory_space<vmem>>, %arg4: memref<8x1xi32, #tpu.memory_space<vmem>>, %arg5: memref<8x128xf32, #tpu.memory_space<vmem>>, %arg6: memref<8x1xf32, #tpu.memory_space<vmem>>, %arg7: memref<8x1xf32, #tpu.memory_space<vmem>>, %arg8: memref<8x1xf32, #tpu.memory_space<vmem>>, %arg9: memref<8x1xf32, #tpu.memory_space<vmem>>) attributes {dimension_semantics = [#tpu.dimension_semantics<parallel>, #tpu.dimension_semantics<arbitrary>], iteration_bounds = array<i64: 2, 4>, scalar_prefetch = 0 : i64, scratch_operands = 3 : i64, tpu.core_type = #tpu.core_type<tc>, window_params = [{transform_indices = @transform_0, window_bounds = array<i64: 8, 128>}, {transform_indices = @transform_1, window_bounds = array<i64: 128, 128>}, {transform_indices = @transform_2, window_bounds = array<i64: 8, 1>}, {transform_indices = @transform_3, window_bounds = array<i64: 8, 128>}, {transform_indices = @transform_4, window_bounds = array<i64: 8, 1>}]} {
    %c0_i32 = arith.constant 0 : i32
    %0 = arith.cmpi eq, %arg1, %c0_i32 : i32
    %1 = arith.extui %0 : i1 to i32
    %c0_i32_0 = arith.constant 0 : i32
    %2 = arith.cmpi ne, %1, %c0_i32_0 : i32
    scf.if %2 {
      %cst_33 = arith.constant -1.000000e+30 : f32
      %68 = vector.broadcast %cst_33 : f32 to vector<8x1xf32>
      %c0_34 = arith.constant 0 : index
      %c0_35 = arith.constant 0 : index
      %69 = vector.load %arg7[%c0_34, %c0_35] : memref<8x1xf32, #tpu.memory_space<vmem>>, vector<8x1xf32>
      tpu.vector_store %arg7[%c0_34, %c0_35], %68 {strides = array<i32>} : memref<8x1xf32, #tpu.memory_space<vmem>>, vector<8x1xf32>,
      %cst_36 = arith.constant 0.000000e+00 : f32
      %70 = vector.broadcast %cst_36 : f32 to vector<8x1xf32>
      %c0_37 = arith.constant 0 : index
      %c0_38 = arith.constant 0 : index
      %71 = vector.load %arg8[%c0_37, %c0_38] : memref<8x1xf32, #tpu.memory_space<vmem>>, vector<8x1xf32>
      tpu.vector_store %arg8[%c0_37, %c0_38], %70 {strides = array<i32>} : memref<8x1xf32, #tpu.memory_space<vmem>>, vector<8x1xf32>,
      %cst_39 = arith.constant 0.000000e+00 : f32
      %72 = vector.broadcast %cst_39 : f32 to vector<8x1xf32>
      %c0_40 = arith.constant 0 : index
      %c0_41 = arith.constant 0 : index
      %73 = vector.load %arg9[%c0_40, %c0_41] : memref<8x1xf32, #tpu.memory_space<vmem>>, vector<8x1xf32>
      tpu.vector_store %arg9[%c0_40, %c0_41], %72 {strides = array<i32>} : memref<8x1xf32, #tpu.memory_space<vmem>>, vector<8x1xf32>,
    } else {
    }
    %c0 = arith.constant 0 : index
    %c0_1 = arith.constant 0 : index
    %3 = vector.load %arg2[%c0, %c0_1] : memref<8x128xbf16, #tpu.memory_space<vmem>>, vector<8x128xbf16>
    %c0_2 = arith.constant 0 : index
    %c0_3 = arith.constant 0 : index
    %4 = vector.load %arg3[%c0_2, %c0_3] : memref<128x128xbf16, #tpu.memory_space<vmem>>, vector<128x128xbf16>
    %cst = arith.constant dense<0.000000e+00> : vector<8x128xf32>
    %5 = tpu.matmul %3, %4, %cst {dimension_numbers = #tpu.dot_dimension_numbers<[1], [0], [0], [1], [0, 0, 1, 1], [], []>} : vector<8x128xbf16>, vector<128x128xbf16>, vector<8x128xf32> -> vector<8x128xf32>
    %c0_4 = arith.constant 0 : index
    %c0_5 = arith.constant 0 : index
    %6 = vector.load %arg4[%c0_4, %c0_5] : memref<8x1xi32, #tpu.memory_space<vmem>>, vector<8x1xi32>
    %c128_i32 = arith.constant 128 : i32
    %7 = arith.muli %arg1, %c128_i32 : i32
    %8 = tpu.iota {dimensions = array<i32: 1>} : vector<8x128xi32>
    %9 = vector.broadcast %7 : i32 to vector<8x128xi32>
    %10 = arith.addi %9, %8 : vector<8x128xi32>
    %11 = vector.broadcast %6 : vector<8x1xi32> to vector<8x128xi32>
    %12 = arith.cmpi eq, %10, %11 : vector<8x128xi32>
    %cst_6 = arith.constant 0.000000e+00 : f32
    %13 = vector.broadcast %cst_6 : f32 to vector<8x128xf32>
    %14 = arith.select %12, %5, %13 : vector<8x128xi1>, vector<8x128xf32>
    %cst_7 = arith.constant dense<0.000000e+00> : vector<8xf32>
    %15 = vector.multi_reduction <add>, %14, %cst_7 [1] : vector<8x128xf32> to vector<8xf32>
    %16 = vector.shape_cast %15 : vector<8xf32> to vector<8x1xf32>
    %17 = arith.mulf %16, %16 : vector<8x1xf32>
    %cst_8 = arith.constant 1.000000e+00 : f32
    %18 = vector.broadcast %cst_8 : f32 to vector<8x1xf32>
    %19 = arith.subf %18, %17 : vector<8x1xf32>
    %cst_9 = arith.constant 0.000000e+00 : f32
    %20 = vector.broadcast %cst_9 : f32 to vector<8x1xf32>
    %21 = arith.maximumf %19, %20 : vector<8x1xf32>
    %22 = math.sqrt %21 : vector<8x1xf32>
    %cst_10 = arith.constant 0.87758255 : f32
    %23 = vector.broadcast %cst_10 : f32 to vector<8x1xf32>
    %24 = arith.mulf %16, %23 : vector<8x1xf32>
    %cst_11 = arith.constant 0.47942555 : f32
    %25 = vector.broadcast %cst_11 : f32 to vector<8x1xf32>
    %26 = arith.mulf %22, %25 : vector<8x1xf32>
    %27 = arith.subf %24, %26 : vector<8x1xf32>
    %cst_12 = arith.constant -0.87758255 : f32
    %28 = vector.broadcast %cst_12 : f32 to vector<8x1xf32>
    %29 = arith.cmpf ogt, %16, %28 : vector<8x1xf32>
    %cst_13 = arith.constant 0.239712775 : f32
    %30 = vector.broadcast %cst_13 : f32 to vector<8x1xf32>
    %31 = arith.subf %16, %30 : vector<8x1xf32>
    %32 = arith.select %29, %27, %31 : vector<8x1xi1>, vector<8x1xf32>
    %33 = arith.subf %32, %16 : vector<8x1xf32>
    %cst_14 = arith.constant 3.000000e+01 : f32
    %34 = vector.broadcast %cst_14 : f32 to vector<8x1xf32>
    %35 = arith.mulf %33, %34 : vector<8x1xf32>
    %cst_15 = arith.constant 3.000000e+01 : f32
    %36 = vector.broadcast %cst_15 : f32 to vector<8x128xf32>
    %37 = arith.mulf %5, %36 : vector<8x128xf32>
    %cst_16 = arith.constant 0.000000e+00 : f32
    %38 = vector.shape_cast %35 : vector<8x1xf32> to vector<8x1xf32>
    %39 = vector.broadcast %38 : vector<8x1xf32> to vector<8x128xf32>
    %40 = vector.broadcast %cst_16 : f32 to vector<8x128xf32>
    %41 = arith.select %12, %39, %40 : vector<8x128xi1>, vector<8x128xf32>
    %42 = arith.addf %37, %41 : vector<8x128xf32>
    %c128_i32_17 = arith.constant 128 : i32
    %43 = arith.muli %arg1, %c128_i32_17 : i32
    %44 = vector.broadcast %43 : i32 to vector<8x1xi32>
    %45 = arith.cmpi sge, %6, %44 : vector<8x1xi32>
    %c128_i32_18 = arith.constant 128 : i32
    %46 = arith.muli %arg1, %c128_i32_18 : i32
    %c128_i32_19 = arith.constant 128 : i32
    %47 = arith.addi %46, %c128_i32_19 : i32
    %48 = vector.broadcast %47 : i32 to vector<8x1xi32>
    %49 = arith.cmpi slt, %6, %48 : vector<8x1xi32>
    %50 = arith.andi %45, %49 : vector<8x1xi1>
    %cst_20 = arith.constant 3.000000e+01 : f32
    %51 = vector.broadcast %cst_20 : f32 to vector<8x1xf32>
    %52 = arith.mulf %32, %51 : vector<8x1xf32>
    %cst_21 = arith.constant 0.000000e+00 : f32
    %53 = vector.broadcast %cst_21 : f32 to vector<8x1xf32>
    %54 = arith.select %50, %52, %53 : vector<8x1xi1>, vector<8x1xf32>
    %c0_22 = arith.constant 0 : index
    %c0_23 = arith.constant 0 : index
    %55 = vector.load %arg5[%c0_22, %c0_23] : memref<8x128xf32, #tpu.memory_space<vmem>>, vector<8x128xf32>
    tpu.vector_store %arg5[%c0_22, %c0_23], %42 {strides = array<i32>} : memref<8x128xf32, #tpu.memory_space<vmem>>, vector<8x128xf32>,
    %c0_24 = arith.constant 0 : index
    %c0_25 = arith.constant 0 : index
    %56 = vector.load %arg9[%c0_24, %c0_25] : memref<8x1xf32, #tpu.memory_space<vmem>>, vector<8x1xf32>
    %57 = arith.addf %56, %54 : vector<8x1xf32>
    %c0_26 = arith.constant 0 : index
    %c0_27 = arith.constant 0 : index
    %58 = vector.load %arg9[%c0_26, %c0_27] : memref<8x1xf32, #tpu.memory_space<vmem>>, vector<8x1xf32>
    tpu.vector_store %arg9[%c0_26, %c0_27], %57 {strides = array<i32>} : memref<8x1xf32, #tpu.memory_space<vmem>>, vector<8x1xf32>,
    %c3_i32 = arith.constant 3 : i32
    %59 = arith.cmpi ne, %arg1, %c3_i32 : i32
    %60 = arith.extui %59 : i1 to i32
    %c0_i32_28 = arith.constant 0 : i32
    %61 = arith.cmpi ne, %60, %c0_i32_28 : i32
    scf.if %61 {
      %c0_33 = arith.constant 0 : index
      %c0_34 = arith.constant 0 : index
      %68 = vector.load %arg7[%c0_33, %c0_34] : memref<8x1xf32, #tpu.memory_space<vmem>>, vector<8x1xf32>
      %cst_35 = arith.constant dense<0xFF800000> : vector<8xf32>
      %69 = vector.multi_reduction <maximumf>, %42, %cst_35 [1] : vector<8x128xf32> to vector<8xf32>
      %70 = vector.shape_cast %69 : vector<8xf32> to vector<8x1xf32>
      %71 = arith.maximumf %68, %70 : vector<8x1xf32>
      %c0_36 = arith.constant 0 : index
      %c0_37 = arith.constant 0 : index
      %72 = vector.load %arg7[%c0_36, %c0_37] : memref<8x1xf32, #tpu.memory_space<vmem>>, vector<8x1xf32>
      %73 = arith.subf %72, %71 : vector<8x1xf32>
      %74 = math.exp %73 : vector<8x1xf32>
      %c0_38 = arith.constant 0 : index
      %c0_39 = arith.constant 0 : index
      %75 = vector.load %arg8[%c0_38, %c0_39] : memref<8x1xf32, #tpu.memory_space<vmem>>, vector<8x1xf32>
      %76 = arith.mulf %74, %75 : vector<8x1xf32>
      %77 = vector.broadcast %71 : vector<8x1xf32> to vector<8x128xf32>
      %78 = arith.subf %42, %77 : vector<8x128xf32>
      %79 = math.exp %78 : vector<8x128xf32>
      %cst_40 = arith.constant dense<0.000000e+00> : vector<8xf32>
      %80 = vector.multi_reduction <add>, %79, %cst_40 [1] : vector<8x128xf32> to vector<8xf32>
      %81 = vector.shape_cast %80 : vector<8xf32> to vector<8x1xf32>
      %82 = arith.addf %76, %81 : vector<8x1xf32>
      %c0_41 = arith.constant 0 : index
      %c0_42 = arith.constant 0 : index
      %83 = vector.load %arg8[%c0_41, %c0_42] : memref<8x1xf32, #tpu.memory_space<vmem>>, vector<8x1xf32>
      tpu.vector_store %arg8[%c0_41, %c0_42], %82 {strides = array<i32>} : memref<8x1xf32, #tpu.memory_space<vmem>>, vector<8x1xf32>,
      %c0_43 = arith.constant 0 : index
      %c0_44 = arith.constant 0 : index
      %84 = vector.load %arg7[%c0_43, %c0_44] : memref<8x1xf32, #tpu.memory_space<vmem>>, vector<8x1xf32>
      tpu.vector_store %arg7[%c0_43, %c0_44], %71 {strides = array<i32>} : memref<8x1xf32, #tpu.memory_space<vmem>>, vector<8x1xf32>,
    } else {
    }
    %c3_i32_29 = arith.constant 3 : i32
    %62 = arith.cmpi eq, %arg1, %c3_i32_29 : i32
    %63 = arith.extui %62 : i1 to i32
    %c0_i32_30 = arith.constant 0 : i32
    %64 = arith.cmpi ne, %63, %c0_i32_30 : i32
    scf.if %64 {
      %c500_i32 = arith.constant 500 : i32
      %68 = vector.broadcast %c500_i32 : i32 to vector<8x128xi32>
      %69 = arith.cmpi slt, %10, %68 : vector<8x128xi32>
      %cst_33 = arith.constant -1.000000e+30 : f32
      %70 = vector.broadcast %cst_33 : f32 to vector<8x128xf32>
      %71 = arith.select %69, %42, %70 : vector<8x128xi1>, vector<8x128xf32>
      %c0_34 = arith.constant 0 : index
      %c0_35 = arith.constant 0 : index
      %72 = vector.load %arg7[%c0_34, %c0_35] : memref<8x1xf32, #tpu.memory_space<vmem>>, vector<8x1xf32>
      %cst_36 = arith.constant dense<0xFF800000> : vector<8xf32>
      %73 = vector.multi_reduction <maximumf>, %71, %cst_36 [1] : vector<8x128xf32> to vector<8xf32>
      %74 = vector.shape_cast %73 : vector<8xf32> to vector<8x1xf32>
      %75 = arith.maximumf %72, %74 : vector<8x1xf32>
      %c0_37 = arith.constant 0 : index
      %c0_38 = arith.constant 0 : index
      %76 = vector.load %arg7[%c0_37, %c0_38] : memref<8x1xf32, #tpu.memory_space<vmem>>, vector<8x1xf32>
      %77 = arith.subf %76, %75 : vector<8x1xf32>
      %78 = math.exp %77 : vector<8x1xf32>
      %c0_39 = arith.constant 0 : index
      %c0_40 = arith.constant 0 : index
      %79 = vector.load %arg8[%c0_39, %c0_40] : memref<8x1xf32, #tpu.memory_space<vmem>>, vector<8x1xf32>
      %80 = arith.mulf %78, %79 : vector<8x1xf32>
      %81 = vector.broadcast %75 : vector<8x1xf32> to vector<8x128xf32>
      %82 = arith.subf %71, %81 : vector<8x128xf32>
      %83 = math.exp %82 : vector<8x128xf32>
      %cst_41 = arith.constant dense<0.000000e+00> : vector<8xf32>
      %84 = vector.multi_reduction <add>, %83, %cst_41 [1] : vector<8x128xf32> to vector<8xf32>
      %85 = vector.shape_cast %84 : vector<8xf32> to vector<8x1xf32>
      %86 = arith.addf %80, %85 : vector<8x1xf32>
      %c0_42 = arith.constant 0 : index
      %c0_43 = arith.constant 0 : index
      %87 = vector.load %arg8[%c0_42, %c0_43] : memref<8x1xf32, #tpu.memory_space<vmem>>, vector<8x1xf32>
      tpu.vector_store %arg8[%c0_42, %c0_43], %86 {strides = array<i32>} : memref<8x1xf32, #tpu.memory_space<vmem>>, vector<8x1xf32>,
      %c0_44 = arith.constant 0 : index
      %c0_45 = arith.constant 0 : index
      %88 = vector.load %arg7[%c0_44, %c0_45] : memref<8x1xf32, #tpu.memory_space<vmem>>, vector<8x1xf32>
      tpu.vector_store %arg7[%c0_44, %c0_45], %75 {strides = array<i32>} : memref<8x1xf32, #tpu.memory_space<vmem>>, vector<8x1xf32>,
    } else {
    }
    %c3_i32_31 = arith.constant 3 : i32
    %65 = arith.cmpi eq, %arg1, %c3_i32_31 : i32
    %66 = arith.extui %65 : i1 to i32
    %c0_i32_32 = arith.constant 0 : i32
    %67 = arith.cmpi ne, %66, %c0_i32_32 : i32
    scf.if %67 {
      %c0_33 = arith.constant 0 : index
      %c0_34 = arith.constant 0 : index
      %68 = vector.load %arg7[%c0_33, %c0_34] : memref<8x1xf32, #tpu.memory_space<vmem>>, vector<8x1xf32>
      %c0_35 = arith.constant 0 : index
      %c0_36 = arith.constant 0 : index
      %69 = vector.load %arg8[%c0_35, %c0_36] : memref<8x1xf32, #tpu.memory_space<vmem>>, vector<8x1xf32>
      %70 = math.log %69 : vector<8x1xf32>
      %71 = arith.addf %68, %70 : vector<8x1xf32>
      %c0_37 = arith.constant 0 : index
      %c0_38 = arith.constant 0 : index
      %72 = vector.load %arg9[%c0_37, %c0_38] : memref<8x1xf32, #tpu.memory_space<vmem>>, vector<8x1xf32>
      %73 = arith.subf %71, %72 : vector<8x1xf32>
      %c8_i32 = arith.constant 8 : i32
      %74 = arith.muli %arg0, %c8_i32 : i32
      %75 = tpu.iota {dimensions = array<i32: 0>} : vector<8x1xi32>
      %76 = vector.broadcast %74 : i32 to vector<8x1xi32>
      %77 = arith.addi %76, %75 : vector<8x1xi32>
      %c14_i32 = arith.constant 14 : i32
      %78 = vector.broadcast %c14_i32 : i32 to vector<8x1xi32>
      %79 = arith.cmpi slt, %77, %78 : vector<8x1xi32>
      %cst_39 = arith.constant 0.000000e+00 : f32
      %80 = vector.broadcast %cst_39 : f32 to vector<8x1xf32>
      %81 = arith.select %79, %73, %80 : vector<8x1xi1>, vector<8x1xf32>
      %c0_40 = arith.constant 0 : index
      %c0_41 = arith.constant 0 : index
      %82 = vector.load %arg6[%c0_40, %c0_41] : memref<8x1xf32, #tpu.memory_space<vmem>>, vector<8x1xf32>
      tpu.vector_store %arg6[%c0_40, %c0_41], %81 {strides = array<i32>} : memref<8x1xf32, #tpu.memory_space<vmem>>, vector<8x1xf32>,
    } else {
    }
    return
  }
  func.func @transform_0(%arg0: i32, %arg1: i32) -> (i32, i32) {
    %c0_i32 = arith.constant 0 : i32
    %c0_i32_0 = arith.constant 0 : i32
    return %arg0, %c0_i32 : i32, i32
  }
  func.func @transform_1(%arg0: i32, %arg1: i32) -> (i32, i32) {
    %c0_i32 = arith.constant 0 : i32
    %c0_i32_0 = arith.constant 0 : i32
    return %c0_i32, %arg1 : i32, i32
  }
  func.func @transform_2(%arg0: i32, %arg1: i32) -> (i32, i32) {
    %c0_i32 = arith.constant 0 : i32
    %c0_i32_0 = arith.constant 0 : i32
    return %arg0, %c0_i32 : i32, i32
  }
  func.func @transform_3(%arg0: i32, %arg1: i32) -> (i32, i32) {
    %c0_i32 = arith.constant 0 : i32
    return %arg0, %arg1 : i32, i32
  }
  func.func @transform_4(%arg0: i32, %arg1: i32) -> (i32, i32) {
    %c0_i32 = arith.constant 0 : i32
    %c0_i32_0 = arith.constant 0 : i32
    return %arg0, %c0_i32 : i32, i32
  }
}

</mosaic_0001>

<bundles_post_ra>
// kernel: tpu_custom_call.1
= control target key start
LH: loop header
LB: loop body
LE: loop exit
PB: predicated region body
PF: predicated region fallthrough
CT: control target
= control target key end

     0   :  { %s1318_s0 = inlined_call_operand.vmem [shape: bf16[16,128], index: 0, kind: input, shape index: {}]   ;;  %s1319_s1 = inlined_call_operand.hbm [shape: bf16[128,512], index: 1, kind: input, shape index: {}]   ;;  %s1320_s2 = inlined_call_operand.vmem [shape: s32[16,1], index: 2, kind: input, shape index: {}]   ;;  %s1321_s3 = inlined_call_operand.hbm [shape: f32[16,512], index: 3, kind: output, shape index: {0}]   ;;  %s1322_s4 = inlined_call_operand.vmem [shape: f32[16,1], index: 4, kind: output, shape index: {1}]  }
   0x1   :  { %1329 = sst [smem:[#allocation15_spill]] %s1319_s1 }
   0x2   :  { %10 = vsyncpa [#allocation6], 0 }
   0x3   :  { %12 = vsyncpa [#allocation6 + $0x1], 0 }
   0x4   :  { %13 = vsyncpa [#allocation7], 0 }
   0x5   :  { %15 = vsyncpa [#allocation7 + $0x1], 0  ;;  %s1043_s15 = smov 0   ;;  %s1045_s16 = smov 0  }
   0x6   :  { %s1047_s17 = smov 0   ;;  %s1049_s18 = smov 0  }
   0x7   :  { %s1051_s19 = smov 0   ;;  %s1053_s20 = smov 0  }
   0x8   :  { %s1055_s21 = smov 0   ;;  %s1057_s22 = smov 0  }
   0x9   :  { %s1059_s23 = smov 0   ;;  %s1061_s24 = smov 0  }
   0xa   :  { %s1063_s25 = smov 0  }
   0xb LB: > { %1330 = sst [smem:[#allocation11_spill]] %s996_s23  ;;  %s657_s26 = sadd.s32 4294967295, %s1004_s25   ;;  %s1004_s25 = sphi %s1063_s25, %s21_s25   ;;  %s1000_s24 = sphi %s1061_s24, %s1348_s24   ;;  %s996_s23 = sphi %s1059_s23, %s1347_s23   ;;  %s992_s22 = sphi %s1057_s22, %s1346_s22   ;;  %s988_s21 = sphi %s1055_s21, %s1345_s21   ;;  %s984_s20 = sphi %s1053_s20, %s1354_s20   ;;  %s980_s19 = sphi %s1051_s19, %s1353_s19   ;;  %s976_s18 = sphi %s1049_s18, %s1352_s18   ;;  %s972_s17 = sphi %s1047_s17, %s1351_s17   ;;  %s968_s16 = sphi %s1045_s16, %s1350_s16   ;;  %s964_s15 = sphi %s1043_s15, %s1349_s15  }
   0xc   : > { %1331 = sst [smem:[#allocation12_spill]] %s1000_s24  ;;  %s658_s27 = sadd.s32 4294967294, %s1004_s25  }
   0xd   : > { %s30_s28 = sadd.s32 1, %s996_s23  ;;  %s33_s29 = sadd.s32 1, %s1000_s24 }
   0xe   : > { %p31_p0 = scmp.ge.s32.totalorder %s30_s28, 4  ;;  %s66_s30 = sadd.s32 1, %s984_s20 }
   0xf   : > { %p73_p1 = scmp.ne.s32.totalorder %s984_s20, %s980_s19  ;;  %p74_p2 = scmp.eq.s32.totalorder %s1004_s25, 0 }
  0x10   : > { %s1356_s28 = smov (%p31_p0, %s30_s28), 0  ;;  %s1358_s29 = smov (!%p31_p0, %s33_s29), %s1000_s24 }
  0x11   : > { %1332 = sst [smem:[#allocation13_spill]] %s1356_s28  ;;  %s63_s5 = ssub.s32 %s996_s23, %s1356_s28 }
  0x12   : > { %p1109_p3 = por %p74_p2, %p73_p1  ;;  %p35_p4 = scmp.ge.s32.totalorder %s1358_s29, 2 }
  0x13   : > { %p64_p5 = scmp.eq.s32.totalorder %s63_s5, 0  ;;  %p79_p6 = scmp.ne.s32.totalorder %s980_s19, %s976_s18 }
  0x14   : > { %p80_p7 = scmp.eq.s32.totalorder %s657_s26, 0  ;;  %s1360_s29 = smov (%p35_p4, %s1358_s29), 0 }
  0x15   : > { %1334 = sst [smem:[#allocation14_spill]] %s1360_s29  ;;  %s115_s9 = ssub.s32 %s1000_s24, %s1360_s29 }
  0x16   : > { %s1117_s7 = scalar_select %p64_p5, %s984_s20, %s66_s30  }
  0x17   : > { %p1119_p8 = por %p80_p7, %p79_p6  ;;  %s117_s10 = sor.u32 %s115_s9, %s63_s5 }
  0x18   : > { %s120_s11 = sadd.s32 1, %s972_s17  ;;  %p118_p9 = scmp.eq.s32.totalorder %s117_s10, 0 }
  0x19   : > { %p130_p10 = scmp.ne.s32.totalorder %s972_s17, %s968_s16  ;;  %p131_p11 = scmp.eq.s32.totalorder %s657_s26, 7 }
  0x1a   : > { %p136_p12 = scmp.ne.s32.totalorder %s968_s16, %s964_s15  ;;  %p137_p0 = scmp.eq.s32.totalorder %s658_s27, 7 }
  0x1b   : > { %s1131_s12 = scalar_select %p118_p9, %s972_s17, %s120_s11  }
  0x1c   : > { %p1133_p13 = por %p131_p11, %p130_p10  ;;  %p729_p1 = scmp.lt.s32.totalorder %s1004_s25, 8 }
  0x1d   : > { %p1138_p2 = por %p137_p0, %p136_p12  ;;  %s190_s18 = sand.u32 1, %s984_s20  }
  0x1e   : > { %s1336_s13 = scalar_select %p1133_p13, 1, 0 }
  0x1f   : > { %s1337_s14 = scalar_select %p1138_p2, 1, 0 }
  0x20   : > { %s661_s30 = sshll.u32 %s190_s18, 6  ;;  %s662_s5 = sshll.u32 %s996_s23, 6 }
  0x21   : > { %s1338_s1 = sld [smem:[#allocation15_spill]]  ;;  %s194_s11 = scalar_lea.vmem [#allocation5], %s661_s30 }
  0x22   : > { %s200_s29 = sshll.u32 %s194_s11, 4  ;;  %p1153_p4 = pnand %p729_p1, %p1109_p3  ;;  %s1149_s29 = int_to_ptr.vmem [resolvable:$true] %s200_s29 }
  0x23   : > { %s1157_s28 = scalar_lea.sflag [#allocation6], %s190_s18 }
  0x24   : > { %p854_p6 = pneg %p1153_p4 }
  0x27   : > { %s1147_s26 = scalar_lea.hbm %s1338_s1, %s662_s5  ;;  %s857_s6 = scalar_lea.hbm %s1338_s1, 4096 }
  0x28   : > { %s852_s9 = scalar_lea.hbm %s1147_s26, 1024  ;;  %p858_p3 = scmp.lt.u32.totalorder %s1147_s26, %s1338_s1 }
  0x29   : > { %p853_p5 = scmp.ne.s32.totalorder %s1147_s26, %s852_s9  ;;  %p859_p10 = scmp.lt.u32.totalorder %s857_s6, %s852_s9 }
  0x2a   : > { %p861_p12 = scmp.lt.u32.totalorder %s852_s9, %s1147_s26 }
  0x2b   : > { %p855_p7 = pnand %p854_p6, %p853_p5  ;;  %p860_p11 = por %p859_p10, %p858_p3 }
  0x2d   : > { %p856_p9 = pneg %p855_p7  ;;  %p862_p0 = por %p861_p12, %p860_p11 }
  0x2f   : > { %p863_p1 = pnand %p862_p0, %p856_p9 }
  0x31   : > { %866 = shalt.err (!%p863_p1)
}
  0x32   : > { %s867_s18 = scalar_lea.vmem %s1149_s29, 1024  ;;  %s1006_s30 = smov [#allocation5]  }
  0x33   : > { %p868_p5 = scmp.ne.s32.totalorder %s1149_s29, %s867_s18  ;;  %s872_s5 = sshll.u32 %s1006_s30, 4  ;;  %s873_s5 = int_to_ptr.vmem [resolvable:$false] %s872_s5 }
  0x34   : > { %s874_s10 = scalar_lea.vmem %s873_s5, 2048  ;;  %p875_p13 = scmp.lt.s32.totalorder %s1149_s29, %s873_s5 }
  0x35   : > { %p870_p7 = pnand %p868_p5, %p854_p6  ;;  %p876_p3 = scmp.lt.s32.totalorder %s874_s10, %s867_s18 }
  0x37   : > { %p871_p2 = pneg %p870_p7  ;;  %p877_p10 = por %p876_p3, %p875_p13 }
  0x39   : > { %p878_p11 = pnand %p877_p10, %p871_p2 }
  0x3b   : > { %881 = shalt.err (!%p878_p11)
}
  0x3c   : > { %s1007_s9 = smov 256   ;;  %s1008_s6 = smov 64  }
  0x3d   : > { %s1009_s11 = smov 4   ;;  %p663_p6 = scmp.ge.s32.totalorder %s1004_s25, 1 }
  0x3e   : > { %724 = dma.hbm_to_vmem [thread:$0]  (!%p1153_p4), %s1147_s26, 1024, %s1149_s29, %s1157_s28, %s1007_s9, %s1008_s6, %s1009_s11  }
  0x3f   : > { %p215_p9 = scmp.lt.s32.totalorder %s1004_s25, 9 }
  0x41   : > { %p216_p12 = pnand %p663_p6, %p215_p9 }
  0x42   : > { %s221_s18 = sand.u32 (!%p216_p12), 1, %s980_s19  }
  0x43   : > { %219 = sbr.rel (%p216_p12) target bundleno = 1426 (0x592), region = 32  ;;  %s664_s30 = sshll.u32 (!%p216_p12), %s221_s18, 6 }
  0x44   : > { %s222_s5 = scalar_lea.sflag (!%p216_p12), [#allocation6], %s221_s18  ;;  %s1188_s10 = scalar_lea.vmem (!%p216_p12), [#allocation5], %s664_s30 }
  0x4a   : > { %955 = dma.done.wait (%p1119_p8), %s222_s5, 1024  }
  0x4b   : > { %957 = vsyncadd (%p1119_p8), %s222_s5, 4294966272  ;;  %s1328_s28 = sand.u32 1, %s968_s16   ;;  %p262_p13 = scmp.lt.s32.totalorder %s992_s22, 1 }
  0x4c   : > { %s1198_s29 = sshll.u32 %s1328_s28, 3  ;;  %p669_p8 = scmp.ne.s32.totalorder %s988_s21, 0 }
  0x4d   : > { %s263_s26 = scalar_select %p262_p13, %s992_s22, 1 }
  0x4e   : > { %s255_s28 = scalar_lea.vmem [#allocation8], %s1198_s29  ;;  %278 = sbr.rel (%p669_p8) target bundleno = 85 (0x55), region = 40  ;;  %vm279_vm0 = vcmask (!%p669_p8), 7168   ;;  %v1010_v0 = vmov (!%p669_p8), -1e+30   ;;  %v1011_v1 = vmov (!%p669_p8), 0.0  }
  0x4f   : > { %s666_s27 = sshll.u32 %s263_s26, 2  ;;  %s667_s9 = sshll.u32 %s263_s26, 3  ;;  %280 = vst.msk [vmem:[#allocation2] sm:$0xff] (!%p669_p8), %vm279_vm0, %v1010_v0  ;;  %281 = vst.msk [vmem:[#allocation3] sm:$0xff] (!%p669_p8), %vm279_vm0, %v1011_v1 }
  0x50   : > { %s1204_s18 = scalar_lea.vmem %s1318_s0, %s666_s27  ;;  %s269_s5 = scalar_lea.vmem %s1320_s2, %s667_s9  ;;  %282 = vst.msk [vmem:[#allocation4] sm:$0xff] (!%p669_p8), %vm279_vm0, %v1011_v1 }
  0x51   : > { %s1212_s23 = scalar_lea.vmem %s1322_s4, %s667_s9 }
  0x55 PF: > { %v830_v2 = vld [vmem:[%s1188_s10] sm:$0xff]   ;;  %v1012_v3 = vmov 0.0   ;;  %v831_v4 = vld [vmem:[%s1188_s10 + $0x8] sm:$0xff]   ;;  %vm1013_vm1 = vmmov 0   ;;  %v1014_v5 = vmov 0   ;;  %s678_s1 = sshll.u32 %s988_s21, 7  ;;  %v390_v17 = vlaneseq }
  0x56   : > { %697 = vmatprep.subr.bf16.mxu0 %v1012_v3  ;;  %713 = vmatprep.mubr.msk.bf16.mxu0 %vm1013_vm1, %v1012_v3  ;;  %s423_s24 = sadd.s32 128, %s678_s1  ;;  %v832_v6 = vld [vmem:[%s1188_s10 + $0x10] sm:$0xff]   ;;  %v388_v8 = vld [vmem:[%s269_s5] sm:$0xff]  ;;  %v392_v9 = vstv %s678_s1  ;;  %v833_v10 = vld [vmem:[%s1188_s10 + $0x18] sm:$0xff]   ;;  %vm432_vm9 = vcmask 7168   ;;  %p680_p2 = scmp.eq.s32.totalorder %s988_s21, 3 }
  0x57   : > { %698 = vmatpush3.bf16.msra.mxu0 %v830_v2  ;;  %829 = vset.pattern.permute.xlu0 %v1014_v5  ;;  %v424_v7 = vstv %s423_s24  ;;  %vm422_vm3 = vcmp.ge.s32.totalorder %v388_v8, %v392_v9  ;;  %v834_v12 = vld [vmem:[%s1188_s10 + $0x20] sm:$0xff]   ;;  %v835_v13 = vld [vmem:[%s1188_s10 + $0x28] sm:$0xff]   ;;  %v836_v14 = vld [vmem:[%s1188_s10 + $0x30] sm:$0xff]   ;;  %v391_v18 = vand.u32 127, %v390_v17  ;;  %v1015_v49 = vmov (!%p680_p2), 0  }
  0x58   : > { %699 = vmatprep.subr.bf16.mxu0 %v1012_v3  ;;  %395 = vperm.xlu0 %829, %v388_v8   ;;  %vm425_vm2 = vcmp.lt.s32.totalorder %v388_v8, %v424_v7  ;;  %v837_v15 = vld [vmem:[%s1188_s10 + $0x38] sm:$0xff]   ;;  %v283_v16 = vld [vmem:[%s1204_s18] sm:$0xf]  ;;  %v445_v60 = vld [vmem:[#allocation3] sm:$0xff] (!%p680_p2) }
  0x59   : > { %vm1221_vm4 = vmand %vm422_vm3, %vm425_vm2  ;;  %v1231_v19 = vadd.s32 %v392_v9, %v391_v18  ;;  %v430_v40 = vld [vmem:[#allocation4] sm:$0xff]  ;;  %v438_v50 = vld [vmem:[#allocation2] sm:$0xff] (!%p680_p2) }
  0x5b   : > { %700 = vmatpush3.bf16.msra.mxu0 %v831_v4 }
  0x5c   : > { %701 = vmatprep.subr.bf16.mxu0 %v1012_v3  ;;  %840 = vset.pattern.permute.xlu0 (!%p680_p2), %v1015_v49 }
  0x5f   : > { %702 = vmatpush3.bf16.msra.mxu0 %v832_v6 }
  0x60   : > { %703 = vmatprep.subr.bf16.mxu0 %v1012_v3 }
  0x63   : > { %704 = vmatpush3.bf16.msra.mxu0 %v833_v10 }
  0x64   : > { %705 = vmatprep.subr.bf16.mxu0 %v1012_v3 }
  0x67   : > { %706 = vmatpush3.bf16.msra.mxu0 %v834_v12 }
  0x68   : > { %707 = vmatprep.subr.bf16.mxu0 %v1012_v3 }
  0x6b   : > { %708 = vmatpush3.bf16.msra.mxu0 %v835_v13 }
  0x6c   : > { %709 = vmatprep.subr.bf16.mxu0 %v1012_v3 }
  0x6f   : > { %710 = vmatpush3.bf16.msra.mxu0 %v836_v14 }
  0x70   : > { %711 = vmatprep.subr.bf16.mxu0 %v1012_v3 }
  0x73   : > { %712 = vmatpush3.bf16.msra.mxu0 %v837_v15 }
  0x76   : > { %714 = vmatmul.mubr.bf16.vlgmr.msra.gmra.mrb[0].mxu0 %v283_v16 }
  0xd7   : > { %v396_v20 = vpop.permute.xlu0 %395 }
  0xd8   : > { %vm397_vm5 = vcmp.eq.s32.totalorder %v1231_v19, %v396_v20 }
 0x149   : > { %v382_v21 = vpop.f32.mrb[0].mxu0 }
 0x14a   : > { %v715_v22 = vpop.f32.mrb[1].mxu0  ;;  %v398_v23 = vsel %vm397_vm5, %v382_v21, 0.0  ;;  %v419_v45 = vmul.f32 30.0, %v382_v21 }
 0x14b   : > { %399 = vadd.xlane.f32.xlu0 %v398_v23  ;;  %v385_v24 = vpop.f32.mrb[2].mxu0 }
 0x14c   : > { %v716_v25 = vpop.f32.mrb[3].mxu0 }
 0x1d8   : > { %v400_v26 = vpop.xlane.xlu0 %399 }
 0x1d9   : > { %v401_v27 = vmul.f32 %v400_v26, %v400_v26  ;;  %v411_v35 = vmul.f32 0.87758255, %v400_v26  ;;  %v679_v38 = vadd.f32 -0.23971277, %v400_v26  ;;  %vm414_vm8 = vcmp.gt.f32.partialorder %v400_v26, -0.87758255 }
 0x1db   : > { %v402_v28 = vsub.f32 1.0, %v401_v27 }
 0x1dd   : > { %v403_v29 = vmax.f32 %v402_v28, 0.0 }
 0x1df   : > { %838 = vrsqrt.f32 %v403_v29  ;;  %vm406_vm6 = vcmp.eq.f32.partialorder %v403_v29, inf  ;;  %v409_v32 = vand.u32 2147483648, %v403_v29  ;;  %vm408_vm7 = vcmp.eq.f32.partialorder %v403_v29, 0.0 }
 0x1e9   : > { %v839_v30 = vpop.eup %838 }
 0x1ea   : > { %v405_v31 = vmul.f32 %v839_v30, %v403_v29 }
 0x1ec   : > { %v407_v33 = vsel %vm406_vm6, %v403_v29, %v405_v31 }
 0x1ed   : > { %v410_v34 = vsel %vm408_vm7, %v409_v32, %v407_v33 }
 0x1ee   : > { %v412_v36 = vmul.f32 0.47942555, %v410_v34 }
 0x1f0   : > { %v413_v37 = vsub.f32 %v411_v35, %v412_v36 }
 0x1f2   : > { %v416_v39 = vsel %vm414_vm8, %v413_v37, %v679_v38 }
 0x1f3   : > { %v417_v41 = vsub.f32 %v416_v39, %v400_v26  ;;  %v427_v42 = vmul.f32 30.0, %v416_v39 }
 0x1f4   : > { %437 = sbr.rel (%p680_p2) target bundleno = 938 (0x3aa), region = 44 }
 0x1f5   : > { %v418_v43 = vmul.f32 30.0, %v417_v41  ;;  %v428_v44 = vsel %vm1221_vm4, %v427_v42, 0.0 }
 0x1f6   : > { %v431_v46 = vadd.f32 %v430_v40, %v428_v44 }
 0x1f7   : > { %v420_v47 = vsel %vm397_vm5, %v418_v43, 0.0 }
 0x1f8   : > { %v421_v48 = vadd.f32 %v420_v47, %v419_v45  ;;  %433 = vst.msk [vmem:[#allocation4] sm:$0xff] %vm432_vm9, %v431_v46 }
 0x1fa   : > { %429 = vst [vmem:[%s255_s28] sm:$0xff] %v421_v48  ;;  %439 = vmax.xlane.f32.xlu0 (!%p680_p2), %v421_v48 }
 0x287   : > { %v440_v51 = vpop.xlane.xlu0 %439 }
 0x288   : > { %v441_v52 = vmax.f32 %v438_v50, %v440_v51 }
 0x28a   : > { %v442_v53 = vsub.f32 %v438_v50, %v441_v52  ;;  %459 = vst.msk [vmem:[#allocation2] sm:$0xff] %vm432_vm9, %v441_v52  ;;  %449 = vperm.xlu0 %840, %v441_v52  }
 0x28c   : > { %v443_v58 = vmul.f32 1.442695, %v442_v53 }
 0x309   : > { %v450_v54 = vpop.permute.xlu0 %449 }
 0x30a   : > { %v452_v55 = vsub.f32 %v421_v48, %v450_v54 }
 0x30c   : > { %v453_v56 = vmul.f32 1.442695, %v452_v55 }
 0x30e   : > { %841 = vpow2.f32 %v453_v56 }
 0x30f   : > { %843 = vpow2.f32 %v443_v58 }
 0x318   : > { %v842_v57 = vpop.eup %841 }
 0x319   : > { %455 = vadd.xlane.f32.xlu1 %v842_v57  ;;  %v844_v59 = vpop.eup %843 }
 0x31a   : > { %v446_v61 = vmul.f32 %v844_v59, %v445_v60 }
 0x3a6   : > { %v456_v62 = vpop.xlane.xlu1 %455 }
 0x3a7   : > { %v457_v63 = vadd.f32 %v456_v62, %v446_v61 }
 0x3a9   : > { %458 = vst.msk [vmem:[#allocation3] sm:$0xff] %vm432_vm9, %v457_v63 }
 0x3aa PF: > { %p681_p4 = scmp.ne.s32.totalorder %s988_s21, 3 }
 0x3ab   : > { %vm464_vm10 = vcmp.lt.s32.totalorder (!%p681_p4), %v1231_v19, 500  ;;  %v1016_v1 = vmov (!%p681_p4), 0   ;;  %v466_v2 = vld [vmem:[#allocation2] sm:$0xff] (!%p681_p4)  ;;  %s682_s10 = sshll.u32 (!%p681_p4), %s992_s22, 3  ;;  %v497_v18 = vshrl.u32 (!%p681_p4), %v390_v17, 7 }
 0x3ac   : > { %463 = sbr.rel (%p681_p4) target bundleno = 1399 (0x577), region = 48  ;;  %v465_v0 = vsel (!%p681_p4), %vm464_vm10, %v421_v48, -1e+30  ;;  %845 = vset.pattern.permute.xlu0 (!%p681_p4), %v1016_v1  ;;  %v498_v19 = vstv (!%p681_p4), %s682_s10 }
 0x3ad   : > { %467 = vmax.xlane.f32.xlu0 (!%p681_p4), %v465_v0  ;;  %v499_v21 = vadd.s32 (!%p681_p4), %v498_v19, %v497_v18 }
 0x3ae   : > { %v493_v24 = vld [vmem:[#allocation4] sm:$0xff] (!%p681_p4) }
 0x3af   : > { %vm500_vm11 = vcmp.lt.s32.totalorder (!%p681_p4), %v499_v21, 14 }
 0x3b0   : > { %v473_v12 = vld [vmem:[#allocation3] sm:$0xff] (!%p681_p4) }
 0x43a   : > { %v468_v3 = vpop.xlane.xlu0 %467 }
 0x43b   : > { %v469_v4 = vmax.f32 %v466_v2, %v468_v3 }
 0x43d   : > { %v470_v5 = vsub.f32 %v466_v2, %v469_v4  ;;  %487 = vst.msk [vmem:[#allocation2] sm:$0xff] %vm432_vm9, %v469_v4  ;;  %477 = vperm.xlu0 %845, %v469_v4  }
 0x43f   : > { %v471_v10 = vmul.f32 1.442695, %v470_v5 }
 0x444   : > { %v488_v23 = vld [vmem:[#allocation2] sm:$0xff] }
 0x4bc   : > { %v478_v6 = vpop.permute.xlu0 %477 }
 0x4bd   : > { %v480_v7 = vsub.f32 %v465_v0, %v478_v6 }
 0x4bf   : > { %v481_v8 = vmul.f32 1.442695, %v480_v7 }
 0x4c1   : > { %846 = vpow2.f32 %v481_v8 }
 0x4c2   : > { %848 = vpow2.f32 %v471_v10 }
 0x4cb   : > { %v847_v9 = vpop.eup %846 }
 0x4cc   : > { %483 = vadd.xlane.f32.xlu1 %v847_v9  ;;  %v849_v11 = vpop.eup %848 }
 0x4cd   : > { %v474_v13 = vmul.f32 %v849_v11, %v473_v12 }
 0x559   : > { %v484_v14 = vpop.xlane.xlu1 %483 }
 0x55a   : > { %v485_v15 = vadd.f32 %v484_v14, %v474_v13 }
 0x55c   : > { %486 = vst.msk [vmem:[#allocation3] sm:$0xff] %vm432_vm9, %v485_v15 }
 0x563   : > { %v489_v16 = vld [vmem:[#allocation3] sm:$0xff] }
 0x564   : > { %850 = vlog2.f32 %v489_v16 }
 0x56e   : > { %v851_v20 = vpop.eup %850 }
 0x56f   : > { %v491_v22 = vmul.f32 0.6931472, %v851_v20 }
 0x571   : > { %v492_v25 = vadd.f32 %v491_v22, %v488_v23 }
 0x573   : > { %v494_v26 = vsub.f32 %v492_v25, %v493_v24 }
 0x575   : > { %v501_v27 = vsel %vm500_vm11, %v494_v26, 0.0 }
 0x576   : > { %502 = vst.msk [vmem:[%s1212_s23] sm:$0xff] %vm432_vm9, %v501_v27 }
 0x577 PF: > { %s684_s26 = sshll.u32 %s992_s22, 2  ;;  %s523_s9 = sshll.u32 %s255_s28, 4  ;;  %s1258_s9 = int_to_ptr.vmem [resolvable:$true] %s523_s9 }
 0x578   : > { %s519_s27 = sadd.s32 %s988_s21, %s684_s26  ;;  %s1342_s8 = sand.u32 1, %s968_s16  }
 0x579   : > { %s685_s6 = sshll.u32 %s519_s27, 7  ;;  %s504_s30 = scalar_lea.sflag [#allocation7], %s1342_s8 }
 0x57a   : > { %s521_s23 = scalar_lea.hbm %s1321_s3, %s685_s6  ;;  %s882_s5 = scalar_lea.vmem %s1258_s9, 128 }
 0x57b   : > { %p883_p0 = scmp.ne.s32.totalorder %s1258_s9, %s882_s5  ;;  %p1343_p1 = scmp.ne.s32.totalorder %s1336_s13, 0 }
 0x57c   : > { %s1017_s21 = smov [#allocation8]  }
 0x57d   : > { %p884_p5 = pnand %p883_p0, %p1343_p1  ;;  %s886_s22 = sshll.u32 %s1017_s21, 4  ;;  %s887_s22 = int_to_ptr.vmem [resolvable:$false] %s886_s22 }
 0x57e   : > { %s888_s28 = scalar_lea.vmem %s887_s22, 256  ;;  %p889_p3 = scmp.lt.s32.totalorder %s1258_s9, %s887_s22 }
 0x57f   : > { %p885_p7 = pneg %p884_p5  ;;  %p890_p10 = scmp.lt.s32.totalorder %s888_s28, %s882_s5 }
 0x581   : > { %p891_p11 = por %p890_p10, %p889_p3 }
 0x583   : > { %p892_p6 = pnand %p891_p11, %p885_p7 }
 0x585   : > { %895 = shalt.err (!%p892_p6)
}
 0x586   : > { %s896_s29 = scalar_lea.hbm %s521_s23, 128  ;;  %s900_s10 = scalar_lea.hbm %s1321_s3, 1024 }
 0x587   : > { %p897_p9 = scmp.ne.s32.totalorder %s521_s23, %s896_s29  ;;  %p901_p8 = scmp.lt.u32.totalorder %s521_s23, %s1321_s3 }
 0x588   : > { %p902_p2 = scmp.lt.u32.totalorder %s900_s10, %s896_s29  ;;  %p904_p0 = scmp.lt.u32.totalorder %s896_s29, %s521_s23 }
 0x589   : > { %p898_p12 = pnand %p897_p9, %p1343_p1 }
 0x58a   : > { %p903_p4 = por %p902_p2, %p901_p8 }
 0x58b   : > { %p899_p13 = pneg %p898_p12 }
 0x58c   : > { %p905_p5 = por %p904_p0, %p903_p4 }
 0x58e   : > { %p906_p7 = pnand %p905_p5, %p899_p13 }
 0x590   : > { %909 = shalt.err (!%p906_p7)
}
 0x591   : > { %719 = dma.vmem_to_hbm [thread:$0]  (%p1343_p1), %s1258_s9, 128, %s521_s23, %s504_s30  }
 0x592 PF: > { %p730_p3 = scmp.ge.s32.totalorder %s1004_s25, 2  ;;  %s538_s6 = sand.u32 1, %s964_s15  }
 0x593   : > { %p1344_p10 = scmp.ne.s32.totalorder %s1337_s14, 0  ;;  %s539_s11 = scalar_lea.sflag [#allocation7], %s538_s6 }
 0x595   : > { %p726_p11 = pnand %p730_p3, %p1344_p10 }
 0x597   : > { %959 = dma.done.wait (!%p726_p11), %s539_s11, 128  }
 0x598   : > { %961 = vsyncadd (!%p726_p11), %s539_s11, 4294967168  ;;  %s21_s25 = sadd.s32 1, %s1004_s25   ;;  %s1345_s21 = sld [smem:[#allocation11_spill]] }
 0x599   : > { %p18_p6 = scmp.ge.s32.totalorder %s21_s25, 10   ;;  %s1346_s22 = sld [smem:[#allocation12_spill]] }
 0x59a   : > { %s1347_s23 = sld [smem:[#allocation13_spill]]  ;;  %s1348_s24 = sld [smem:[#allocation14_spill]] }
 0x59b   : > { %s1349_s15 = smov %s968_s16  ;;  %s1350_s16 = smov %s972_s17 }
 0x59c   : > { %s1351_s17 = smov %s1131_s12  ;;  %s1352_s18 = smov %s980_s19 }
 0x59d   : > { %s1353_s19 = smov %s984_s20  ;;  %s1354_s20 = smov %s1117_s7 }
 0x59e   :  { %20 = sbr.rel (!%p18_p6) target bundleno = 11 (0xb), region = 107 }
 0x5a5   :  { %551 = vsyncpa [#allocation6], 1 }
 0x5a6   :  { %553 = vsyncpa [#allocation6 + $0x1], 1 }
 0x5a7   :  { %554 = vsyncpa [#allocation7], 1 }
 0x5a8   :  { %556 = vsyncpa [#allocation7 + $0x1], 1 }

</bundles_post_ra>
